<compile_context>
chip_gen: v5e
topology: v5e:2x2
jax: 0.10.0
libtpu: 0.0.40
codegen_flags: <defaults>
</compile_context>

<pallas_src>
import jax
import jax.numpy as jnp
from jax.experimental import pallas as pl
from jax.experimental.pallas import tpu as pltpu


def fm_kernel(x_ref, t_ref, w0_ref, out_ref):
    # x_ref  : (S, tb)  int indices, batch on the lane axis     (VMEM)
    # t_ref  : (n,)     f32 fused per-token FM table            (SMEM)
    # w0_ref : (1,)     f32 global bias                         (SMEM)
    # out_ref: (1, tb)  f32 lane-dense output block             (VMEM)
    idx = x_ref[...]
    if idx.dtype.itemsize < 4:          # int8/int16 index streams: unpack once,
        idx = idx.astype(jnp.int32)     # keep compares/selects in 32-bit vregs
    n = t_ref.shape[0]

    # n-way unrolled select "gather": exactly one branch matches per element;
    # out-of-range indices fall through to 0 (== the zeroed padding row).
    # 2 VPU ops per table entry per vreg -- fine for n ~ 10.
    # TODO(synk): for n >> 32, switch to a VMEM-table gather or a one-hot
    # bf16 MXU matmul instead of the O(n) select chain.
    val = jnp.zeros(idx.shape, jnp.float32)
    for i in range(n - 1, -1, -1):      # static unroll, n == 10
        val = jnp.where(idx == i, t_ref[i], val)

    # Reduce over S (the sublane axis); result is already a lane-dense row.
    out_ref[...] = jnp.sum(val, axis=0, keepdims=True) + w0_ref[0]


def _pick_batch_tile(batch):
    """Largest lane-dense batch tile: divides B, multiple of 128, <= 8192
    (~256 KiB of int32 indices at S=8) and -- when possible -- keeps the grid
    >= 4 so each v7x TensorCore pipelines at least two steps."""
    cands = [d for d in range(128, min(batch, 8192) + 1, 128) if batch % d == 0]
    if not cands:
        return batch                    # small/odd batch: one full-width block
    pipelined = [d for d in cands if batch // d >= 4]
    return max(pipelined) if pipelined else max(cands)


@jax.jit
def fm_layer_pallas(x, w0, w1, v):
    """x: (B, S) integer indices; w0: (1,); w1: (n, 1); v: (n, k) -> (B,) f32."""
    B, S = x.shape
    n, _ = v.shape

    w1 = w1.astype(jnp.float32)
    v = v.astype(jnp.float32)
    # Fused per-token table: t[i] = W1[i] + 0.5*(||V[i]||^2 - (sum_k V[i])^2).
    t = w1[:, 0] + 0.5 * (jnp.sum(v * v, axis=-1) - jnp.square(jnp.sum(v, axis=-1)))

    # Put the batch on the lane axis.  Narrow integer dtypes pass through
    # unchanged (less DMA); wider-than-32-bit indices are narrowed here and the
    # cast fuses with the transpose in XLA.
    if x.dtype.itemsize > 4:
        x = x.astype(jnp.int32)
    xt = jnp.transpose(x)               # (S, B)

    tb = _pick_batch_tile(B)
    grid = B // tb

    out = pl.pallas_call(
        fm_kernel,
        out_shape=jax.ShapeDtypeStruct((1, B), jnp.float32),
        grid=(grid,),
        in_specs=[
            pl.BlockSpec((S, tb), lambda i: (0, i)),            # index stream
            # Constant-index SMEM operands: fetched once, not re-DMA'd per step.
            pl.BlockSpec(memory_space=pltpu.MemorySpace.SMEM),  # fused table t
            pl.BlockSpec(memory_space=pltpu.MemorySpace.SMEM),  # W0 scalar
        ],
        out_specs=pl.BlockSpec((1, tb), lambda i: (0, i)),      # lane-dense row
        compiler_params=pltpu.CompilerParams(
            dimension_semantics=("parallel",)),
    )(xt, t, w0.reshape(1).astype(jnp.float32))
    return out.reshape(B)


def fm_layer_ref(x, w0, w1, v):
    # Pure-JAX reference mirroring the PyTorch forward exactly.
    linear_part = jnp.sum(w1[x][..., 0], axis=-1) + w0[0]
    ve = v[x]
    interaction_part_1 = jnp.sum(ve, -1) ** 2
    interaction_part_2 = jnp.sum(ve ** 2, -1)
    return linear_part + 0.5 * jnp.sum(interaction_part_2 - interaction_part_1, -1)


if __name__ == "__main__":
    padding_idx = 0
    n, k = 10, 5        # FMLayer defaults
    B, S = 16, 8        # small batch / sequence

    key = jax.random.PRNGKey(0)
    k_w0, k_w1, k_v, k_x = jax.random.split(key, 4)

    # Parameters (torch.randn-style init; padding row zeroed like nn.Embedding).
    W0 = jax.random.normal(k_w0, (1,), dtype=jnp.float32)
    W1 = jax.random.normal(k_w1, (n, 1), dtype=jnp.float32).at[padding_idx].set(0.0)
    V = jax.random.normal(k_v, (n, k), dtype=jnp.float32).at[padding_idx].set(0.0)

    # Integer index input, including some padding (0) entries.
    x = jax.random.randint(k_x, (B, S), 0, n, dtype=jnp.int32)

    out = jax.block_until_ready(fm_layer_pallas(x, W0, W1, V))
    ref = fm_layer_ref(x, W0, W1, V)
    assert out.shape == (B,)
    assert jnp.allclose(out, ref, atol=1e-4, rtol=1e-4), (out, ref)

    # Larger batch exercising the multi-block lane-dense path (tb=256, grid=4).
    B2 = 1024
    x2 = jax.random.randint(jax.random.PRNGKey(1), (B2, S), 0, n, dtype=jnp.int32)
    out2 = jax.block_until_ready(fm_layer_pallas(x2, W0, W1, V))
    ref2 = fm_layer_ref(x2, W0, W1, V)
    assert out2.shape == (B2,)
    assert jnp.allclose(out2, ref2, atol=1e-4, rtol=1e-4), (out2, ref2)

    print("KERNEL_OK")
</pallas_src>

<mosaic_0001>
module attributes {stable_mosaic.version = 11 : i64} {
  func.func @fm_kernel(%arg0: i32, %arg1: memref<8x16xi32, #tpu.memory_space<vmem>>, %arg2: memref<10xf32, #tpu.memory_space<smem>>, %arg3: memref<1xf32, #tpu.memory_space<smem>>, %arg4: memref<1x16xf32, #tpu.memory_space<vmem>>) attributes {dimension_semantics = [#tpu.dimension_semantics<parallel>], iteration_bounds = array<i64: 1>, scalar_prefetch = 0 : i64, scratch_operands = 0 : i64, tpu.core_type = #tpu.core_type<tc>, window_params = [{transform_indices = @transform_0, window_bounds = array<i64: 8, 16>}, {transform_indices = @transform_1, window_bounds = array<i64: 10>}, {transform_indices = @transform_2, window_bounds = array<i64: 1>}, {transform_indices = @transform_3, window_bounds = array<i64: 1, 16>}]} {
    %c0 = arith.constant 0 : index
    %c0_0 = arith.constant 0 : index
    %0 = vector.load %arg1[%c0, %c0_0] : memref<8x16xi32, #tpu.memory_space<vmem>>, vector<8x16xi32>
    %cst = arith.constant 0.000000e+00 : f32
    %1 = vector.broadcast %cst : f32 to vector<8x16xf32>
    %c9_i32 = arith.constant 9 : i32
    %2 = vector.broadcast %c9_i32 : i32 to vector<8x16xi32>
    %3 = arith.cmpi eq, %0, %2 : vector<8x16xi32>
    %c9 = arith.constant 9 : index
    %4 = memref.load %arg2[%c9] : memref<10xf32, #tpu.memory_space<smem>>
    %5 = vector.broadcast %4 : f32 to vector<8x16xf32>
    %6 = arith.select %3, %5, %1 : vector<8x16xi1>, vector<8x16xf32>
    %c8_i32 = arith.constant 8 : i32
    %7 = vector.broadcast %c8_i32 : i32 to vector<8x16xi32>
    %8 = arith.cmpi eq, %0, %7 : vector<8x16xi32>
    %c8 = arith.constant 8 : index
    %9 = memref.load %arg2[%c8] : memref<10xf32, #tpu.memory_space<smem>>
    %10 = vector.broadcast %9 : f32 to vector<8x16xf32>
    %11 = arith.select %8, %10, %6 : vector<8x16xi1>, vector<8x16xf32>
    %c7_i32 = arith.constant 7 : i32
    %12 = vector.broadcast %c7_i32 : i32 to vector<8x16xi32>
    %13 = arith.cmpi eq, %0, %12 : vector<8x16xi32>
    %c7 = arith.constant 7 : index
    %14 = memref.load %arg2[%c7] : memref<10xf32, #tpu.memory_space<smem>>
    %15 = vector.broadcast %14 : f32 to vector<8x16xf32>
    %16 = arith.select %13, %15, %11 : vector<8x16xi1>, vector<8x16xf32>
    %c6_i32 = arith.constant 6 : i32
    %17 = vector.broadcast %c6_i32 : i32 to vector<8x16xi32>
    %18 = arith.cmpi eq, %0, %17 : vector<8x16xi32>
    %c6 = arith.constant 6 : index
    %19 = memref.load %arg2[%c6] : memref<10xf32, #tpu.memory_space<smem>>
    %20 = vector.broadcast %19 : f32 to vector<8x16xf32>
    %21 = arith.select %18, %20, %16 : vector<8x16xi1>, vector<8x16xf32>
    %c5_i32 = arith.constant 5 : i32
    %22 = vector.broadcast %c5_i32 : i32 to vector<8x16xi32>
    %23 = arith.cmpi eq, %0, %22 : vector<8x16xi32>
    %c5 = arith.constant 5 : index
    %24 = memref.load %arg2[%c5] : memref<10xf32, #tpu.memory_space<smem>>
    %25 = vector.broadcast %24 : f32 to vector<8x16xf32>
    %26 = arith.select %23, %25, %21 : vector<8x16xi1>, vector<8x16xf32>
    %c4_i32 = arith.constant 4 : i32
    %27 = vector.broadcast %c4_i32 : i32 to vector<8x16xi32>
    %28 = arith.cmpi eq, %0, %27 : vector<8x16xi32>
    %c4 = arith.constant 4 : index
    %29 = memref.load %arg2[%c4] : memref<10xf32, #tpu.memory_space<smem>>
    %30 = vector.broadcast %29 : f32 to vector<8x16xf32>
    %31 = arith.select %28, %30, %26 : vector<8x16xi1>, vector<8x16xf32>
    %c3_i32 = arith.constant 3 : i32
    %32 = vector.broadcast %c3_i32 : i32 to vector<8x16xi32>
    %33 = arith.cmpi eq, %0, %32 : vector<8x16xi32>
    %c3 = arith.constant 3 : index
    %34 = memref.load %arg2[%c3] : memref<10xf32, #tpu.memory_space<smem>>
    %35 = vector.broadcast %34 : f32 to vector<8x16xf32>
    %36 = arith.select %33, %35, %31 : vector<8x16xi1>, vector<8x16xf32>
    %c2_i32 = arith.constant 2 : i32
    %37 = vector.broadcast %c2_i32 : i32 to vector<8x16xi32>
    %38 = arith.cmpi eq, %0, %37 : vector<8x16xi32>
    %c2 = arith.constant 2 : index
    %39 = memref.load %arg2[%c2] : memref<10xf32, #tpu.memory_space<smem>>
    %40 = vector.broadcast %39 : f32 to vector<8x16xf32>
    %41 = arith.select %38, %40, %36 : vector<8x16xi1>, vector<8x16xf32>
    %c1_i32 = arith.constant 1 : i32
    %42 = vector.broadcast %c1_i32 : i32 to vector<8x16xi32>
    %43 = arith.cmpi eq, %0, %42 : vector<8x16xi32>
    %c1 = arith.constant 1 : index
    %44 = memref.load %arg2[%c1] : memref<10xf32, #tpu.memory_space<smem>>
    %45 = vector.broadcast %44 : f32 to vector<8x16xf32>
    %46 = arith.select %43, %45, %41 : vector<8x16xi1>, vector<8x16xf32>
    %c0_i32 = arith.constant 0 : i32
    %47 = vector.broadcast %c0_i32 : i32 to vector<8x16xi32>
    %48 = arith.cmpi eq, %0, %47 : vector<8x16xi32>
    %c0_1 = arith.constant 0 : index
    %49 = memref.load %arg2[%c0_1] : memref<10xf32, #tpu.memory_space<smem>>
    %50 = vector.broadcast %49 : f32 to vector<8x16xf32>
    %51 = arith.select %48, %50, %46 : vector<8x16xi1>, vector<8x16xf32>
    %cst_2 = arith.constant dense<0.000000e+00> : vector<16xf32>
    %52 = vector.multi_reduction <add>, %51, %cst_2 [0] : vector<8x16xf32> to vector<16xf32>
    %53 = vector.shape_cast %52 : vector<16xf32> to vector<1x16xf32>
    %c0_3 = arith.constant 0 : index
    %54 = memref.load %arg3[%c0_3] : memref<1xf32, #tpu.memory_space<smem>>
    %55 = vector.broadcast %54 : f32 to vector<1x16xf32>
    %56 = arith.addf %53, %55 : vector<1x16xf32>
    %c0_4 = arith.constant 0 : index
    %c0_5 = arith.constant 0 : index
    %57 = vector.load %arg4[%c0_4, %c0_5] : memref<1x16xf32, #tpu.memory_space<vmem>>, vector<1x16xf32>
    tpu.vector_store %arg4[%c0_4, %c0_5], %56 {strides = array<i32>} : memref<1x16xf32, #tpu.memory_space<vmem>>, vector<1x16xf32>,
    return
  }
  func.func @transform_0(%arg0: i32) -> (i32, i32) {
    %c0_i32 = arith.constant 0 : i32
    %c0_i32_0 = arith.constant 0 : i32
    return %c0_i32, %arg0 : i32, i32
  }
  func.func @transform_1(%arg0: i32) -> i32 {
    %c0_i32 = arith.constant 0 : i32
    %c0_i32_0 = arith.constant 0 : i32
    return %c0_i32 : i32
  }
  func.func @transform_2(%arg0: i32) -> i32 {
    %c0_i32 = arith.constant 0 : i32
    %c0_i32_0 = arith.constant 0 : i32
    return %c0_i32 : i32
  }
  func.func @transform_3(%arg0: i32) -> (i32, i32) {
    %c0_i32 = arith.constant 0 : i32
    %c0_i32_0 = arith.constant 0 : i32
    return %c0_i32, %arg0 : i32, i32
  }
}

</mosaic_0001>

<bundles_post_ra>
// kernel: fm_layer_pallas.1
= control target key start
LH: loop header
LB: loop body
LE: loop exit
PB: predicated region body
PF: predicated region fallthrough
CT: control target
= control target key end

     0   :  { %9 = vsyncpa [#allocation5], 0  ;;  %s185_s0 = inlined_call_operand.vmem [shape: s32[8,16], index: 0, kind: input, shape index: {}]   ;;  %s186_s1 = inlined_call_operand.vmem [shape: f32[10], index: 1, kind: input, shape index: {}]   ;;  %s187_s2 = inlined_call_operand.<no memory space> [shape: f32[1], index: 2, kind: input, shape index: {}]   ;;  %s188_s3 = inlined_call_operand.hbm [shape: f32[1,16], index: 3, kind: output, shape index: {}]  }
   0x1   :  { %10 = vsyncpa [#allocation4], 0  ;;  %s18_s14 = sshll.u32 %s186_s1, 4  ;;  %s151_s15 = smov [#allocation3]   ;;  %s19_s14 = int_to_ptr.vmem [resolvable:$true] %s18_s14 }
   0x2   :  { %21 = dma.vmem_to_smem %s19_s14, 16, %s151_s15, [#allocation5]  }
   0x3   :  { %147 = dma.done.wait [#allocation5], 16  }
   0x4   :  { %148 = vsyncadd [#allocation5], 4294967280 }
   0x5   :  { %28 = sfence }
   0x6   :  { %s100_s16 = sld [smem:[#allocation3 + $0x9]]  ;;  %v29_v0 = vld [vmem:[%s185_s0] sm:$0xff]  ;;  %vm70_vm10 = vcmask 130048   ;;  %v79_v27 = vstv %s187_s2  ;;  %s152_s28 = smov [#allocation6]   ;;  %vm81_vm11 = vcmask 122880  }
   0x7   :  { %s101_s19 = sld [smem:[#allocation3 + $0x8]]  ;;  %vm30_vm0 = vcmp.eq.s32.totalorder %v29_v0, 9  ;;  %vm34_vm1 = vcmp.eq.s32.totalorder %v29_v0, 8  ;;  %vm38_vm2 = vcmp.eq.s32.totalorder %v29_v0, 7  ;;  %vm42_vm3 = vcmp.eq.s32.totalorder %v29_v0, 6  ;;  %s88_s29 = sshll.u32 %s152_s28, 4  ;;  %s89_s29 = int_to_ptr.vmem [resolvable:$true] %s88_s29 }
   0x8   :  { %s102_s20 = sld [smem:[#allocation3 + $0x7]]  ;;  %vm46_vm4 = vcmp.eq.s32.totalorder %v29_v0, 5  ;;  %vm50_vm5 = vcmp.eq.s32.totalorder %v29_v0, 4  ;;  %vm54_vm6 = vcmp.eq.s32.totalorder %v29_v0, 3  ;;  %vm58_vm7 = vcmp.eq.s32.totalorder %v29_v0, 2  ;;  %s90_s5 = sshll.u32 %s188_s3, 4  ;;  %s91_s5 = int_to_ptr.hbm [resolvable:$true] %s90_s5 }
   0x9   :  { %s103_s21 = sld [smem:[#allocation3 + $0x6]]  ;;  %vm62_vm8 = vcmp.eq.s32.totalorder %v29_v0, 1  ;;  %vm66_vm9 = vcmp.eq.s32.totalorder %v29_v0, 0 }
   0xa   :  { %s104_s22 = sld [smem:[#allocation3 + $0x5]] }
   0xb   :  { %s105_s23 = sld [smem:[#allocation3 + $0x4]] }
   0xc   :  { %v32_v1 = vstv %s100_s16  ;;  %s106_s1 = sld [smem:[#allocation3 + $0x3]] }
   0xd   :  { %v33_v2 = vsel %vm30_vm0, %v32_v1, 0.0  ;;  %v36_v3 = vstv %s101_s19  ;;  %s107_s24 = sld [smem:[#allocation3 + $0x2]] }
   0xe   :  { %v37_v4 = vsel %vm34_vm1, %v36_v3, %v33_v2  ;;  %v40_v5 = vstv %s102_s20  ;;  %s108_s25 = sld [smem:[#allocation3 + $0x1]] }
   0xf   :  { %v41_v6 = vsel %vm38_vm2, %v40_v5, %v37_v4  ;;  %v44_v7 = vstv %s103_s21  ;;  %s67_s0 = sld [smem:[#allocation3]] }
  0x10   :  { %v45_v8 = vsel %vm42_vm3, %v44_v7, %v41_v6  ;;  %v48_v9 = vstv %s104_s22 }
  0x11   :  { %v49_v10 = vsel %vm46_vm4, %v48_v9, %v45_v8  ;;  %v52_v11 = vstv %s105_s23 }
  0x12   :  { %v53_v12 = vsel %vm50_vm5, %v52_v11, %v49_v10  ;;  %v56_v13 = vstv %s106_s1 }
  0x13   :  { %v57_v14 = vsel %vm54_vm6, %v56_v13, %v53_v12  ;;  %v60_v15 = vstv %s107_s24 }
  0x14   :  { %v61_v16 = vsel %vm58_vm7, %v60_v15, %v57_v14  ;;  %v64_v17 = vstv %s108_s25 }
  0x15   :  { %v65_v18 = vsel %vm62_vm8, %v64_v17, %v61_v16  ;;  %v68_v19 = vstv %s67_s0 }
  0x16   :  { %v69_v20 = vsel %vm66_vm9, %v68_v19, %v65_v18 }
  0x17   :  { %v71_v21 = vsel %vm70_vm10, %v69_v20, 0.0 }
  0x18   :  { %v72_v22 = vrot.slane %v71_v21, 4 }
  0x1a   :  { %v73_v23 = vadd.f32 %v72_v22, %v71_v21 }
  0x1c   :  { %v74_v24 = vrot.slane %v73_v23, 2 }
  0x1e   :  { %v75_v25 = vadd.f32 %v74_v24, %v73_v23 }
  0x20   :  { %v76_v26 = vrot.slane %v75_v25, 1 }
  0x22   :  { %v77_v28 = vadd.f32 %v76_v26, %v75_v25 }
  0x24   :  { %v80_v29 = vadd.f32 %v79_v27, %v77_v28 }
  0x26   :  { %82 = vst.msk [vmem:[#allocation6] sm:$0x1] %vm81_vm11, %v80_v29 }
  0x27   :  { %93 = dma.vmem_to_hbm [thread:$0]  %s89_s29, 16, %s91_s5, [#allocation4]  }
  0x28   :  { %149 = dma.done.wait [#allocation4], 16  }
  0x29   :  { %150 = vsyncadd [#allocation4], 4294967280 }
  0x2a   :  { %98 = vsyncpa [#allocation4], 1 }
  0x2b   :  { %99 = vsyncpa [#allocation5], 1 }

</bundles_post_ra>
